<compile_context>
chip_gen: v7x
topology: tpu7x:2x2x1
jax: 0.10.0
libtpu: 0.0.40
codegen_flags: <defaults>
</compile_context>

<pallas_src>
import jax
import jax.numpy as jnp
from jax.experimental import pallas as pl
from jax.experimental.pallas import tpu as pltpu

B, C, H, W = 2, 4, 16, 16
NUM_MODELS = 3
NUM_CLASSES = 3
META_DIM = 8
HID1, HID2, META_HID = 64, 32, 32

HW = H * W                                # 256 lanes per channel in x_flat
F_HEAD = NUM_MODELS * NUM_CLASSES         # 9 concatenated base-model probs
K0 = 16                                   # [gap(4) | meta(8) | 0(4)]
K1 = 48                                   # [probs(9) | meta_feats(32) | 0(7)]
SLAB_W = HID1                             # 64 lanes; narrower blocks zero-padded

# Row offsets inside the packed weight/bias slab (every section 8-aligned).
R_W0 = 0                                  # (16, 64) block-diag: heads + meta_processor
R_W1 = R_W0 + K0                          # 16: meta_learner Linear(41,64) padded to 48 rows
R_W2 = R_W1 + K1                          # 64: Linear(64,32) padded to 64 cols
R_W3 = R_W2 + HID1                        # 128: Linear(32,3) padded to (64,64)
R_B = R_W3 + HID1                         # 192: bias tile, rows [b0, b1, b2, b3, 0...]
SLAB_ROWS = R_B + 8                       # 200 rows x 64 lanes f32 = 50 KiB


def _ensemble_kernel(x_ref, meta_ref, slab_ref, out_ref):
    x = x_ref[...]                                              # (B, C*HW)
    nb = x.shape[0]

    # Global average pool: 4 lane-sums over 256-lane channel groups (XLU),
    # offsets are multiples of 128 so the slices are lane-aligned.
    inv_hw = 1.0 / float(HW)
    gap_cols = [jnp.sum(x[:, c * HW:(c + 1) * HW], axis=-1, keepdims=True) * inv_hw
                for c in range(C)]
    feats = jnp.concatenate(
        gap_cols + [meta_ref[...], jnp.zeros((nb, K0 - C - META_DIM), jnp.float32)],
        axis=-1)                                                # (B, 16)

    bias = slab_ref[R_B:R_B + 8, :]                             # one aligned (8,64) load

    # Fused base-model heads + meta_processor Linear: one K=16 block-diag dot.
    z0 = jnp.dot(feats, slab_ref[R_W0:R_W0 + K0, :],
                 preferred_element_type=jnp.float32) + bias[0:1, :]   # (B, 64)
    # lanes 0:9 -> base-model logits, lanes 9:41 -> meta_processor pre-activation

    # Per-model softmax (exact divide; EUP/VPU nowhere near saturated here) and
    # meta_processor ReLU (Dropout == identity at inference). No MXU work until
    # the single fused w1 dot below.
    pieces = []
    for m in range(NUM_MODELS):
        lm = z0[:, m * NUM_CLASSES:(m + 1) * NUM_CLASSES]       # (B, 3)
        lm = lm - jnp.max(lm, axis=-1, keepdims=True)
        e = jnp.exp(lm)
        pieces.append(e / jnp.sum(e, axis=-1, keepdims=True))
    pieces.append(jnp.maximum(z0[:, F_HEAD:F_HEAD + META_HID], 0.0))
    pieces.append(jnp.zeros((nb, K1 - F_HEAD - META_HID), jnp.float32))
    feats2 = jnp.concatenate(pieces, axis=-1)                   # (B, 48)

    # meta_learner MLP (Dropouts identity). Padded lanes/rows stay exactly
    # zero (zero weight cols/rows, zero bias), so no masking is needed until
    # the final output slice.
    h1 = jnp.dot(feats2, slab_ref[R_W1:R_W1 + K1, :],
                 preferred_element_type=jnp.float32) + bias[1:2, :]
    h1 = jnp.maximum(h1, 0.0)
    h2 = jnp.dot(h1, slab_ref[R_W2:R_W2 + HID1, :],
                 preferred_element_type=jnp.float32) + bias[2:3, :]
    h2 = jnp.maximum(h2, 0.0)                                   # (B,64), cols>=32 are 0
    o = jnp.dot(h2, slab_ref[R_W3:R_W3 + HID1, :],
                preferred_element_type=jnp.float32) + bias[3:4, :]
    out_ref[...] = o[:, :NUM_CLASSES].astype(out_ref.dtype)


def pack_params(p):
    """Pack all weights/biases into one (200, 64) f32 slab (done once)."""
    slab = jnp.zeros((SLAB_ROWS, SLAB_W), jnp.float32)

    # Block-diagonal first stage (K=16):
    #   rows 0:4,  cols 0:9   = base-model head weights, per-channel
    #   rows 4:12, cols 9:41  = meta_processor Linear weight
    w_head = jnp.transpose(p["wb"], (1, 0, 2)).reshape(C, F_HEAD)       # (4, 9)
    slab = slab.at[R_W0:R_W0 + C, :F_HEAD].set(w_head)
    slab = slab.at[R_W0 + C:R_W0 + C + META_DIM,
                   F_HEAD:F_HEAD + META_HID].set(p["wm"])

    # First meta_learner Linear (41 x 64), rows 0:9 base probs, 9:41 meta feats.
    slab = slab.at[R_W1:R_W1 + F_HEAD, :].set(p["w1b"].reshape(F_HEAD, HID1))
    slab = slab.at[R_W1 + F_HEAD:R_W1 + F_HEAD + META_HID, :].set(p["w1m"])

    # Remaining meta_learner layers, zero-padded to 64 lanes / 64 rows.
    slab = slab.at[R_W2:R_W2 + HID1, :HID2].set(p["w2"])
    slab = slab.at[R_W3:R_W3 + HID2, :NUM_CLASSES].set(p["w3"])

    # Bias tile (8-aligned): row 0 = [bb | bm | 0], row 1 = b1, row 2 = [b2|0],
    # row 3 = [b3|0], rows 4:8 = 0.
    slab = slab.at[R_B, :F_HEAD].set(p["bb"].reshape(F_HEAD))
    slab = slab.at[R_B, F_HEAD:F_HEAD + META_HID].set(p["bm"][0])
    slab = slab.at[R_B + 1, :].set(p["b1"][0])
    slab = slab.at[R_B + 2, :HID2].set(p["b2"][0])
    slab = slab.at[R_B + 3, :NUM_CLASSES].set(p["b3"][0])
    return slab


def stacking_ensemble_forward(x, meta, slab):
    # x.reshape is a free view (no wrapper-side concat / HBM round-trip);
    # channel c of the NCHW image occupies lanes [c*HW, (c+1)*HW).
    x_flat = x.reshape(x.shape[0], -1).astype(jnp.float32)
    out_shape = jax.ShapeDtypeStruct((x.shape[0], NUM_CLASSES), jnp.float32)
    return pl.pallas_call(
        _ensemble_kernel,
        in_specs=[pl.BlockSpec(memory_space=pltpu.MemorySpace.VMEM),
                  pl.BlockSpec(memory_space=pltpu.MemorySpace.VMEM),
                  pl.BlockSpec(memory_space=pltpu.MemorySpace.VMEM)],
        out_specs=pl.BlockSpec(memory_space=pltpu.MemorySpace.VMEM),
        out_shape=out_shape,
    )(x_flat, meta.astype(jnp.float32), slab)


def init_params(key):
    def uni(k, shape, fan_in):
        bound = 1.0 / jnp.sqrt(jnp.float32(fan_in))
        return jax.random.uniform(k, shape, jnp.float32, -bound, bound)

    ks = jax.random.split(key, 12)
    meta_in = NUM_MODELS * NUM_CLASSES + META_HID
    return {
        # synthetic base-model heads: Linear(C, NUM_CLASSES) per model
        "wb": uni(ks[0], (NUM_MODELS, C, NUM_CLASSES), C),
        "bb": uni(ks[1], (NUM_MODELS, NUM_CLASSES), C),
        # meta_processor Linear(META_DIM, 32)
        "wm": uni(ks[2], (META_DIM, META_HID), META_DIM),
        "bm": uni(ks[3], (1, META_HID), META_DIM),
        # meta_learner Linear(meta_in, 64), split into base-prob rows and meta rows
        "w1b": uni(ks[4], (NUM_MODELS, NUM_CLASSES, HID1), meta_in),
        "w1m": uni(ks[5], (META_HID, HID1), meta_in),
        "b1": uni(ks[6], (1, HID1), meta_in),
        # meta_learner Linear(64, 32)
        "w2": uni(ks[7], (HID1, HID2), HID1),
        "b2": uni(ks[8], (1, HID2), HID1),
        # meta_learner Linear(32, NUM_CLASSES)
        "w3": uni(ks[9], (HID2, NUM_CLASSES), HID2),
        "b3": uni(ks[10], (1, NUM_CLASSES), HID2),
    }


def reference_forward(x, meta, p):
    gap = jnp.mean(x, axis=(2, 3))
    probs = []
    for m in range(NUM_MODELS):
        logits = gap @ p["wb"][m] + p["bb"][m]
        probs.append(jax.nn.softmax(logits, axis=1))
    feats = jnp.concatenate(probs, axis=1)
    mf = jnp.maximum(meta @ p["wm"] + p["bm"], 0.0)
    feats = jnp.concatenate([feats, mf], axis=1)
    w1 = jnp.concatenate([p["w1b"].reshape(F_HEAD, HID1), p["w1m"]], axis=0)
    h1 = jnp.maximum(feats @ w1 + p["b1"], 0.0)
    h2 = jnp.maximum(h1 @ p["w2"] + p["b2"], 0.0)
    return h2 @ p["w3"] + p["b3"]


if __name__ == "__main__":
    key = jax.random.PRNGKey(0)
    kx, km, kp = jax.random.split(key, 3)
    x = jax.random.normal(kx, (B, C, H, W), jnp.float32)
    meta = jax.random.normal(km, (B, META_DIM), jnp.float32)
    params = init_params(kp)
    slab = pack_params(params)

    out = stacking_ensemble_forward(x, meta, slab)
    out = jax.block_until_ready(out)

    ref = reference_forward(x, meta, params)
    if not jnp.allclose(out, ref, atol=1e-4, rtol=1e-4):
        raise AssertionError("Pallas kernel output mismatch vs JAX reference")

    print("KERNEL_OK")
</pallas_src>

<mosaic_0001>
module attributes {stable_mosaic.version = 11 : i64} {
  func.func @_ensemble_kernel(%arg0: memref<2x1024xf32, #tpu.memory_space<vmem>>, %arg1: memref<2x8xf32, #tpu.memory_space<vmem>>, %arg2: memref<200x64xf32, #tpu.memory_space<vmem>>, %arg3: memref<2x3xf32, #tpu.memory_space<vmem>>) attributes {dimension_semantics = [], scalar_prefetch = 0 : i64, scratch_operands = 0 : i64, tpu.core_type = #tpu.core_type<tc>} {
    %c0 = arith.constant 0 : index
    %c0_0 = arith.constant 0 : index
    %0 = vector.load %arg0[%c0, %c0_0] : memref<2x1024xf32, #tpu.memory_space<vmem>>, vector<2x1024xf32>
    %1 = vector.extract_strided_slice %0 {offsets = [0, 0], sizes = [2, 256], strides = [1, 1]} : vector<2x1024xf32> to vector<2x256xf32>
    %cst = arith.constant dense<0.000000e+00> : vector<2xf32>
    %2 = vector.multi_reduction <add>, %1, %cst [1] : vector<2x256xf32> to vector<2xf32>
    %3 = vector.shape_cast %2 : vector<2xf32> to vector<2x1xf32>
    %cst_1 = arith.constant 3.906250e-03 : f32
    %4 = vector.broadcast %cst_1 : f32 to vector<2x1xf32>
    %5 = arith.mulf %3, %4 : vector<2x1xf32>
    %6 = vector.extract_strided_slice %0 {offsets = [0, 256], sizes = [2, 256], strides = [1, 1]} : vector<2x1024xf32> to vector<2x256xf32>
    %cst_2 = arith.constant dense<0.000000e+00> : vector<2xf32>
    %7 = vector.multi_reduction <add>, %6, %cst_2 [1] : vector<2x256xf32> to vector<2xf32>
    %8 = vector.shape_cast %7 : vector<2xf32> to vector<2x1xf32>
    %cst_3 = arith.constant 3.906250e-03 : f32
    %9 = vector.broadcast %cst_3 : f32 to vector<2x1xf32>
    %10 = arith.mulf %8, %9 : vector<2x1xf32>
    %11 = vector.extract_strided_slice %0 {offsets = [0, 512], sizes = [2, 256], strides = [1, 1]} : vector<2x1024xf32> to vector<2x256xf32>
    %cst_4 = arith.constant dense<0.000000e+00> : vector<2xf32>
    %12 = vector.multi_reduction <add>, %11, %cst_4 [1] : vector<2x256xf32> to vector<2xf32>
    %13 = vector.shape_cast %12 : vector<2xf32> to vector<2x1xf32>
    %cst_5 = arith.constant 3.906250e-03 : f32
    %14 = vector.broadcast %cst_5 : f32 to vector<2x1xf32>
    %15 = arith.mulf %13, %14 : vector<2x1xf32>
    %16 = vector.extract_strided_slice %0 {offsets = [0, 768], sizes = [2, 256], strides = [1, 1]} : vector<2x1024xf32> to vector<2x256xf32>
    %cst_6 = arith.constant dense<0.000000e+00> : vector<2xf32>
    %17 = vector.multi_reduction <add>, %16, %cst_6 [1] : vector<2x256xf32> to vector<2xf32>
    %18 = vector.shape_cast %17 : vector<2xf32> to vector<2x1xf32>
    %cst_7 = arith.constant 3.906250e-03 : f32
    %19 = vector.broadcast %cst_7 : f32 to vector<2x1xf32>
    %20 = arith.mulf %18, %19 : vector<2x1xf32>
    %c0_8 = arith.constant 0 : index
    %c0_9 = arith.constant 0 : index
    %21 = vector.load %arg1[%c0_8, %c0_9] : memref<2x8xf32, #tpu.memory_space<vmem>>, vector<2x8xf32>
    %cst_10 = arith.constant 0.000000e+00 : f32
    %22 = vector.broadcast %cst_10 : f32 to vector<2x4xf32>
    %23 = tpu.concatenate %5, %10, %15, %20, %21, %22 in 1 : vector<2x1xf32>, vector<2x1xf32>, vector<2x1xf32>, vector<2x1xf32>, vector<2x8xf32>, vector<2x4xf32> -> vector<2x16xf32>
    %c192 = arith.constant 192 : index
    %c0_11 = arith.constant 0 : index
    %24 = vector.load %arg2[%c192, %c0_11] : memref<200x64xf32, #tpu.memory_space<vmem>>, vector<8x64xf32>
    %c0_12 = arith.constant 0 : index
    %c0_13 = arith.constant 0 : index
    %25 = vector.load %arg2[%c0_12, %c0_13] : memref<200x64xf32, #tpu.memory_space<vmem>>, vector<16x64xf32>
    %cst_14 = arith.constant dense<0.000000e+00> : vector<2x64xf32>
    %26 = tpu.matmul %23, %25, %cst_14 {dimension_numbers = #tpu.dot_dimension_numbers<[1], [0], [0], [1], [0, 0, 1, 1], [], []>} : vector<2x16xf32>, vector<16x64xf32>, vector<2x64xf32> -> vector<2x64xf32>
    %27 = vector.extract_strided_slice %24 {offsets = [0, 0], sizes = [1, 64], strides = [1, 1]} : vector<8x64xf32> to vector<1x64xf32>
    %28 = vector.broadcast %27 : vector<1x64xf32> to vector<2x64xf32>
    %29 = arith.addf %26, %28 : vector<2x64xf32>
    %30 = vector.extract_strided_slice %29 {offsets = [0, 0], sizes = [2, 3], strides = [1, 1]} : vector<2x64xf32> to vector<2x3xf32>
    %cst_15 = arith.constant dense<0xFF800000> : vector<2xf32>
    %31 = vector.multi_reduction <maximumf>, %30, %cst_15 [1] : vector<2x3xf32> to vector<2xf32>
    %32 = vector.shape_cast %31 : vector<2xf32> to vector<2x1xf32>
    %33 = vector.broadcast %32 : vector<2x1xf32> to vector<2x3xf32>
    %34 = arith.subf %30, %33 : vector<2x3xf32>
    %35 = math.exp %34 : vector<2x3xf32>
    %cst_16 = arith.constant dense<0.000000e+00> : vector<2xf32>
    %36 = vector.multi_reduction <add>, %35, %cst_16 [1] : vector<2x3xf32> to vector<2xf32>
    %37 = vector.shape_cast %36 : vector<2xf32> to vector<2x1xf32>
    %38 = vector.broadcast %37 : vector<2x1xf32> to vector<2x3xf32>
    %39 = arith.divf %35, %38 : vector<2x3xf32>
    %40 = vector.extract_strided_slice %29 {offsets = [0, 3], sizes = [2, 3], strides = [1, 1]} : vector<2x64xf32> to vector<2x3xf32>
    %cst_17 = arith.constant dense<0xFF800000> : vector<2xf32>
    %41 = vector.multi_reduction <maximumf>, %40, %cst_17 [1] : vector<2x3xf32> to vector<2xf32>
    %42 = vector.shape_cast %41 : vector<2xf32> to vector<2x1xf32>
    %43 = vector.broadcast %42 : vector<2x1xf32> to vector<2x3xf32>
    %44 = arith.subf %40, %43 : vector<2x3xf32>
    %45 = math.exp %44 : vector<2x3xf32>
    %cst_18 = arith.constant dense<0.000000e+00> : vector<2xf32>
    %46 = vector.multi_reduction <add>, %45, %cst_18 [1] : vector<2x3xf32> to vector<2xf32>
    %47 = vector.shape_cast %46 : vector<2xf32> to vector<2x1xf32>
    %48 = vector.broadcast %47 : vector<2x1xf32> to vector<2x3xf32>
    %49 = arith.divf %45, %48 : vector<2x3xf32>
    %50 = vector.extract_strided_slice %29 {offsets = [0, 6], sizes = [2, 3], strides = [1, 1]} : vector<2x64xf32> to vector<2x3xf32>
    %cst_19 = arith.constant dense<0xFF800000> : vector<2xf32>
    %51 = vector.multi_reduction <maximumf>, %50, %cst_19 [1] : vector<2x3xf32> to vector<2xf32>
    %52 = vector.shape_cast %51 : vector<2xf32> to vector<2x1xf32>
    %53 = vector.broadcast %52 : vector<2x1xf32> to vector<2x3xf32>
    %54 = arith.subf %50, %53 : vector<2x3xf32>
    %55 = math.exp %54 : vector<2x3xf32>
    %cst_20 = arith.constant dense<0.000000e+00> : vector<2xf32>
    %56 = vector.multi_reduction <add>, %55, %cst_20 [1] : vector<2x3xf32> to vector<2xf32>
    %57 = vector.shape_cast %56 : vector<2xf32> to vector<2x1xf32>
    %58 = vector.broadcast %57 : vector<2x1xf32> to vector<2x3xf32>
    %59 = arith.divf %55, %58 : vector<2x3xf32>
    %60 = vector.extract_strided_slice %29 {offsets = [0, 9], sizes = [2, 32], strides = [1, 1]} : vector<2x64xf32> to vector<2x32xf32>
    %cst_21 = arith.constant 0.000000e+00 : f32
    %61 = vector.broadcast %cst_21 : f32 to vector<2x32xf32>
    %62 = arith.maximumf %60, %61 : vector<2x32xf32>
    %cst_22 = arith.constant 0.000000e+00 : f32
    %63 = vector.broadcast %cst_22 : f32 to vector<2x7xf32>
    %64 = tpu.concatenate %39, %49, %59, %62, %63 in 1 : vector<2x3xf32>, vector<2x3xf32>, vector<2x3xf32>, vector<2x32xf32>, vector<2x7xf32> -> vector<2x48xf32>
    %c16 = arith.constant 16 : index
    %c0_23 = arith.constant 0 : index
    %65 = vector.load %arg2[%c16, %c0_23] : memref<200x64xf32, #tpu.memory_space<vmem>>, vector<48x64xf32>
    %cst_24 = arith.constant dense<0.000000e+00> : vector<2x64xf32>
    %66 = tpu.matmul %64, %65, %cst_24 {dimension_numbers = #tpu.dot_dimension_numbers<[1], [0], [0], [1], [0, 0, 1, 1], [], []>} : vector<2x48xf32>, vector<48x64xf32>, vector<2x64xf32> -> vector<2x64xf32>
    %67 = vector.extract_strided_slice %24 {offsets = [1, 0], sizes = [1, 64], strides = [1, 1]} : vector<8x64xf32> to vector<1x64xf32>
    %68 = vector.broadcast %67 : vector<1x64xf32> to vector<2x64xf32>
    %69 = arith.addf %66, %68 : vector<2x64xf32>
    %cst_25 = arith.constant 0.000000e+00 : f32
    %70 = vector.broadcast %cst_25 : f32 to vector<2x64xf32>
    %71 = arith.maximumf %69, %70 : vector<2x64xf32>
    %c64 = arith.constant 64 : index
    %c0_26 = arith.constant 0 : index
    %72 = vector.load %arg2[%c64, %c0_26] : memref<200x64xf32, #tpu.memory_space<vmem>>, vector<64x64xf32>
    %cst_27 = arith.constant dense<0.000000e+00> : vector<2x64xf32>
    %73 = tpu.matmul %71, %72, %cst_27 {dimension_numbers = #tpu.dot_dimension_numbers<[1], [0], [0], [1], [0, 0, 1, 1], [], []>} : vector<2x64xf32>, vector<64x64xf32>, vector<2x64xf32> -> vector<2x64xf32>
    %74 = vector.extract_strided_slice %24 {offsets = [2, 0], sizes = [1, 64], strides = [1, 1]} : vector<8x64xf32> to vector<1x64xf32>
    %75 = vector.broadcast %74 : vector<1x64xf32> to vector<2x64xf32>
    %76 = arith.addf %73, %75 : vector<2x64xf32>
    %cst_28 = arith.constant 0.000000e+00 : f32
    %77 = vector.broadcast %cst_28 : f32 to vector<2x64xf32>
    %78 = arith.maximumf %76, %77 : vector<2x64xf32>
    %c128 = arith.constant 128 : index
    %c0_29 = arith.constant 0 : index
    %79 = vector.load %arg2[%c128, %c0_29] : memref<200x64xf32, #tpu.memory_space<vmem>>, vector<64x64xf32>
    %cst_30 = arith.constant dense<0.000000e+00> : vector<2x64xf32>
    %80 = tpu.matmul %78, %79, %cst_30 {dimension_numbers = #tpu.dot_dimension_numbers<[1], [0], [0], [1], [0, 0, 1, 1], [], []>} : vector<2x64xf32>, vector<64x64xf32>, vector<2x64xf32> -> vector<2x64xf32>
    %81 = vector.extract_strided_slice %24 {offsets = [3, 0], sizes = [1, 64], strides = [1, 1]} : vector<8x64xf32> to vector<1x64xf32>
    %82 = vector.broadcast %81 : vector<1x64xf32> to vector<2x64xf32>
    %83 = arith.addf %80, %82 : vector<2x64xf32>
    %84 = vector.extract_strided_slice %83 {offsets = [0, 0], sizes = [2, 3], strides = [1, 1]} : vector<2x64xf32> to vector<2x3xf32>
    %c0_31 = arith.constant 0 : index
    %c0_32 = arith.constant 0 : index
    %85 = vector.load %arg3[%c0_31, %c0_32] : memref<2x3xf32, #tpu.memory_space<vmem>>, vector<2x3xf32>
    tpu.vector_store %arg3[%c0_31, %c0_32], %84 {strides = array<i32>} : memref<2x3xf32, #tpu.memory_space<vmem>>, vector<2x3xf32>,
    return
  }
}

</mosaic_0001>

<bundles_post_ra>
// kernel: tpu_custom_call.1
= control target key start
LH: loop header
LB: loop body
LE: loop exit
PB: predicated region body
PF: predicated region fallthrough
CT: control target
= control target key end

     0   :  { %v21_v0 = vlaneseq  ;;  %v680_v1 = vmov 1983009808   ;;  %s861_s0 = inlined_call_operand.vmem [shape: f32[2,1024], index: 0, kind: input, shape index: {}]   ;;  %s862_s1 = inlined_call_operand.vmem [shape: f32[2,8], index: 1, kind: input, shape index: {}]   ;;  %s863_s2 = inlined_call_operand.vmem [shape: f32[200,64], index: 2, kind: input, shape index: {}]   ;;  %s864_s3 = inlined_call_operand.hbm [shape: f32[2,3], index: 3, kind: output, shape index: {}]  }
   0x1   :  { %v19_v2 = vunpack.c.l.s4 %v680_v1 }
   0x2   :  { %8 = vsyncpa [#allocation3], 0  ;;  %v15_v3 = vld [vmem:[%s861_s0] sm:$0xff]  ;;  %v711_v4 = vshrl.u32 %v21_v0, 7  ;;  %v16_v5 = vld [vmem:[%s861_s0 + $0x8] sm:$0xff]  ;;  %vm28_vm0 = vcmask 1041408  }
   0x3   :  { %v20_v6 = vunpack.c.0.s8 %v19_v2  ;;  %v35_v7 = vcombine.high %v15_v3, %v15_v3  ;;  %v69_v8 = vcombine.high %v16_v5, %v16_v5  ;;  %v102_v30 = vld [vmem:[%s863_s2] sm:$0xff]  ;;  %v103_v31 = vld [vmem:[%s863_s2 + $0x8] sm:$0xff]  ;;  %v681_v33 = vmov 0.0|0.0   ;;  %s684_s21 = smov 4   ;;  %s685_s23 = smov 125  }
   0x4   :  { %v599_v32 = vpack.c.bf16 %v103_v31, %v102_v30  ;;  %598 = vmatprep.subr.bf16.mxu0 %v681_v33  ;;  %601 = vmatprep.subr.bf16.mxu1 %v681_v33  ;;  %v86_v34 = vld [vmem:[%s862_s1] sm:$0x3]  ;;  %vm682_vm1 = vmmov 0   ;;  %v683_v35 = vmov 0.0   ;;  %vm91_vm2 = vcmask 7168   ;;  %s686_s24 = smov 122  }
   0x5   :  { %v23_v9 = vsub.s32 %v20_v6, %v711_v4  ;;  %542 = vmatprep.mubr.msk.f32.mxu0 %vm682_vm1, %v683_v35  ;;  %557 = vmatprep.mubr.msk.f32.mxu1 %vm682_vm1, %v683_v35  ;;  %vm93_vm3 = vcmask 15360   ;;  %vm95_vm4 = vcmask 23552   ;;  %vm97_vm5 = vcmask 31744   ;;  %v748_v51 = vld [vmem:[%s863_s2 + $0xc0] sm:$0xff]  ;;  %s687_s13 = smov [#allocation2]  }
   0x6   :  { %600 = vmatpush3.bf16.msra.mxu0 %v599_v32  ;;  %vm99_vm6 = vcmask 97280   ;;  %vm108_vm7 = vcmask 130048   ;;  %v106_v50 = vsub.s32 0, %v711_v4  ;;  %vm194_vm8 = vcmask 42008   ;;  %s498_s14 = sshll.u32 %s687_s13, 4  ;;  %s499_s14 = int_to_ptr.vmem [resolvable:$true] %s498_s14 }
   0x7   :  { %v24_v10 = vrot.slane %v15_v3, %v23_v9  ;;  %v59_v11 = vrot.slane %v16_v5, %v23_v9  ;;  %v42_v12 = vrot.slane %v35_v7, %v23_v9  ;;  %v76_v13 = vrot.slane %v69_v8, %v23_v9  ;;  %610 = vmatprep.subr.bf16.mxu0 %v681_v33  ;;  %p661_p1 = scmp.lt.s32.totalorder %s499_s14, %s499_s14 }
   0x8   :  { %v107_v52 = vrot.slane %v748_v51, %v106_v50  ;;  %vm210_vm9 = vcmask 66608   ;;  %vm182_vm10 = vcmask 17408   ;;  %vm228_vm11 = vcmask 48128   ;;  %v406_v50 = vld [vmem:[%s863_s2 + $0x80] sm:$0xff] }
   0x9   :  { %v25_v14 = vcombine.high %v24_v10, %v24_v10  ;;  %v29_v15 = vsel %vm28_vm0, %v24_v10, 0.0  ;;  %v60_v16 = vcombine.high %v59_v11, %v59_v11  ;;  %v63_v17 = vsel %vm28_vm0, %v59_v11, 0.0 }
   0xa   :  { %v43_v18 = vcombine.high %v42_v12, %v42_v12  ;;  %v77_v19 = vcombine.high %v76_v13, %v76_v13  ;;  %v46_v22 = vsel %vm28_vm0, %v42_v12, 0.0  ;;  %v80_v23 = vsel %vm28_vm0, %v76_v13, 0.0  ;;  %v234_v13 = vld [vmem:[%s863_s2 + $0x10] sm:$0xff] }
   0xb   :  { %v30_v20 = vsel %vm28_vm0, %v25_v14, 0.0  ;;  %v64_v21 = vsel %vm28_vm0, %v60_v16, 0.0  ;;  %v235_v14 = vld [vmem:[%s863_s2 + $0x18] sm:$0xff]  ;;  %v236_v16 = vld [vmem:[%s863_s2 + $0x20] sm:$0xff]  ;;  %vm230_vm12 = vcmask 72704   ;;  %vm232_vm13 = vcmask 334848  }
   0xc   :  { %v31_v24 = vadd.f32 %v30_v20, %v29_v15  ;;  %v65_v25 = vadd.f32 %v64_v21, %v63_v17  ;;  %v47_v26 = vsel %vm28_vm0, %v43_v18, 0.0  ;;  %v81_v27 = vsel %vm28_vm0, %v77_v19, 0.0  ;;  %v237_v17 = vld [vmem:[%s863_s2 + $0x28] sm:$0xff]  ;;  %v238_v19 = vld [vmem:[%s863_s2 + $0x30] sm:$0xff]  ;;  %v239_v20 = vld [vmem:[%s863_s2 + $0x38] sm:$0xff] }
   0xd   :  { %v48_v28 = vadd.f32 %v47_v26, %v46_v22  ;;  %v82_v29 = vadd.f32 %v81_v27, %v80_v23  ;;  %v602_v15 = vpack.c.bf16 %v235_v14, %v234_v13  ;;  %v605_v18 = vpack.c.bf16 %v237_v17, %v236_v16  ;;  %v319_v22 = vld [vmem:[%s863_s2 + $0x40] sm:$0xff]  ;;  %v320_v23 = vld [vmem:[%s863_s2 + $0x48] sm:$0xff]  ;;  %v322_v26 = vld [vmem:[%s863_s2 + $0x58] sm:$0xff] }
   0xe   :  { %32 = vadd.xlane.f32.xlu0 %v31_v24  ;;  %66 = vadd.xlane.f32.xlu1 %v65_v25  ;;  %v608_v21 = vpack.c.bf16 %v239_v20, %v238_v19  ;;  %v321_v24 = vld [vmem:[%s863_s2 + $0x50] sm:$0xff]  ;;  %v611_v25 = vpack.c.bf16 %v320_v23, %v319_v22  ;;  %vm244_vm14 = vcmask 392192   ;;  %vm331_vm15 = vcmask 523264  }
   0xf   :  { %603 = vmatpush3.bf16.msra.mxu1 %v602_v15  ;;  %v614_v27 = vpack.c.bf16 %v322_v26, %v321_v24 }
  0x10   :  { %604 = vmatprep.subr.bf16.mxu1 %v681_v33 }
  0x12   :  { %49 = vadd.xlane.f32.xlu0 %v48_v28  ;;  %83 = vadd.xlane.f32.xlu1 %v82_v29  ;;  %v323_v28 = vld [vmem:[%s863_s2 + $0x60] sm:$0xff]  ;;  %v324_v29 = vld [vmem:[%s863_s2 + $0x68] sm:$0xff] }
  0x13   :  { %606 = vmatpush3.bf16.msra.mxu1 %v605_v18  ;;  %v617_v30 = vpack.c.bf16 %v324_v29, %v323_v28 }
  0x14   :  { %607 = vmatprep.subr.bf16.mxu1 %v681_v33 }
  0x17   :  { %609 = vmatpush3.bf16.msra.mxu1 %v608_v21 }
  0x18   :  { %622 = vmatprep.subr.bf16.mxu1 %v681_v33 }
  0x28   :  { %88 = vrot.lane.b32.xlu0 %v86_v34, %s684_s21 }
  0x9b   :  { %v33_v36 = vpop.xlane.xlu0 %32  ;;  %v67_v37 = vpop.xlane.xlu1 %66 }
  0x9c   :  { %v34_v40 = vmul.f32 0.00390625, %v33_v36  ;;  %v68_v43 = vmul.f32 0.00390625, %v67_v37 }
  0x9f   :  { %v50_v38 = vpop.xlane.xlu0 %49  ;;  %v84_v39 = vpop.xlane.xlu1 %83 }
  0xa0   :  { %v51_v41 = vmul.f32 0.00390625, %v50_v38  ;;  %v85_v42 = vmul.f32 0.00390625, %v84_v39 }
  0xa2   :  { %v92_v44 = vsel %vm91_vm2, %v34_v40, %v51_v41 }
  0xa3   :  { %v94_v45 = vsel %vm93_vm3, %v92_v44, %v68_v43  ;;  %v89_v46 = vpop.permute.xlu0 %88 }
  0xa4   :  { %v96_v47 = vsel %vm95_vm4, %v94_v45, %v85_v42 }
  0xa5   :  { %v98_v48 = vsel %vm97_vm5, %v96_v47, %v89_v46  ;;  %v325_v47 = vld [vmem:[%s863_s2 + $0x70] sm:$0xff] }
  0xa6   :  { %v100_v49 = vsel %vm99_vm6, %v98_v48, 0.0  ;;  %v326_v48 = vld [vmem:[%s863_s2 + $0x78] sm:$0xff] }
  0xa7   :  { %543 = vmatmul.mubr.msk.f32.vlgmr.msra.gmra.mrb[0].mxu0 %vm108_vm7, %v100_v49  ;;  %v620_v49 = vpack.c.bf16 %v326_v48, %v325_v47 }
  0xa8   :  { %576 = vmatprep.mubr.msk.f32.mxu0 %vm682_vm1, %v683_v35  ;;  %612 = vmatpush3.bf16.msra.mxu0 %v611_v25 }
  0xa9   :  { %613 = vmatprep.subr.bf16.mxu0 %v681_v33 }
  0xac   :  { %615 = vmatpush3.bf16.msra.mxu0 %v614_v27 }
  0xad   :  { %616 = vmatprep.subr.bf16.mxu0 %v681_v33 }
  0xb0   :  { %618 = vmatpush3.bf16.msra.mxu0 %v617_v30 }
  0xb1   :  { %619 = vmatprep.subr.bf16.mxu0 %v681_v33 }
  0xb4   :  { %621 = vmatpush3.bf16.msra.mxu0 %v620_v49 }
 0x17a   :  { %v178_v53 = vpop.f32.mrb[0].mxu0 }
 0x17b   :  { %v751_v54 = vadd.f32 %v178_v53, %v107_v52  ;;  %v544_v55 = vpop.f32.mrb[1].mxu0  ;;  %v407_v52 = vld [vmem:[%s863_s2 + $0x88] sm:$0xff] }
 0x17c   :  { %v623_v53 = vpack.c.bf16 %v407_v52, %v406_v50 }
 0x17d   :  { %v195_v56 = vsel %vm194_vm8, %v751_v54, -inf  ;;  %v211_v57 = vsel %vm210_vm9, %v751_v54, -inf  ;;  %v183_v58 = vsel %vm182_vm10, %v751_v54, -inf  ;;  %v226_v42 = vmax.f32 %v751_v54, 0.0 }
 0x17e   :  { %196 = vmax.xlane.f32.xlu1 %v195_v56  ;;  %v410_v56 = vld [vmem:[%s863_s2 + $0xa0] sm:$0xff] }
 0x182   :  { %212 = vmax.xlane.f32.xlu1 %v211_v57  ;;  %v411_v57 = vld [vmem:[%s863_s2 + $0xa8] sm:$0xff] }
 0x186   :  { %184 = vmax.xlane.f32.xlu1 %v183_v58  ;;  %v629_v58 = vpack.c.bf16 %v411_v57, %v410_v56 }
 0x20b   :  { %v197_v59 = vpop.xlane.xlu1 %196 }
 0x20c   :  { %v198_v60 = vsub.f32 %v751_v54, %v197_v59  ;;  %v242_v59 = vsub.s32 1, %v711_v4 }
 0x20e   :  { %v199_v61 = vmul.f32 1.442695, %v198_v60  ;;  %v243_v60 = vrot.slane %v748_v51, %v242_v59 }
 0x20f   :  { %v213_v62 = vpop.xlane.xlu1 %212 }
 0x210   :  { %644 = vpow2.f32 %v199_v61  ;;  %v214_v63 = vsub.f32 %v751_v54, %v213_v62 }
 0x212   :  { %v215_v0 = vmul.f32 1.442695, %v214_v63 }
 0x213   :  { %v185_v3 = vpop.xlane.xlu1 %184 }
 0x214   :  { %646 = vpow2.f32 %v215_v0  ;;  %v186_v5 = vsub.f32 %v751_v54, %v185_v3  ;;  %v409_v54 = vld [vmem:[%s863_s2 + $0x98] sm:$0xff] }
 0x216   :  { %v187_v6 = vmul.f32 1.442695, %v186_v5 }
 0x218   :  { %648 = vpow2.f32 %v187_v6 }
 0x21a   :  { %v645_v1 = vpop.eup %644 }
 0x21b   :  { %202 = vrot.lane.b32.xlu1 %v645_v1, %s685_s23 }
 0x21e   :  { %v647_v2 = vpop.eup %646 }
 0x21f   :  { %218 = vrot.lane.b32.xlu0 %v647_v2, %s686_s24 }
 0x222   :  { %v649_v7 = vpop.eup %648 }
 0x223   :  { %v189_v8 = vsel %vm182_vm10, %v649_v7, 0.0 }
 0x23e   :  { %190 = vadd.xlane.f32.xlu0 %v189_v8 }
 0x28d   :  { %v203_v9 = vpop.permute.xlu1 %202 }
 0x28e   :  { %v205_v10 = vsel %vm182_vm10, %v203_v9, 0.0 }
 0x28f   :  { %206 = vadd.xlane.f32.xlu1 %v205_v10  ;;  %v416_v10 = vsub.s32 3, %v711_v4 }
 0x291   :  { %v219_v11 = vpop.permute.xlu0 %218 }
 0x292   :  { %v221_v12 = vsel %vm182_vm10, %v219_v11, 0.0  ;;  %v417_v11 = vrot.slane %v748_v51, %v416_v10 }
 0x293   :  { %222 = vadd.xlane.f32.xlu0 %v221_v12 }
 0x2cb   :  { %v191_v31 = vpop.xlane.xlu0 %190 }
 0x31c   :  { %v207_v32 = vpop.xlane.xlu1 %206 }
 0x31d   :  { %650 = vrcp.f32 %v207_v32 }
 0x31e   :  { %652 = vrcp.f32 %v191_v31 }
 0x320   :  { %v223_v34 = vpop.xlane.xlu0 %222 }
 0x321   :  { %654 = vrcp.f32 %v223_v34 }
 0x327   :  { %v651_v36 = vpop.eup %650 }
 0x328   :  { %v653_v37 = vpop.eup %652  ;;  %v209_v38 = vmul.f32 %v651_v36, %v645_v1  ;;  %v412_v1 = vld [vmem:[%s863_s2 + $0xb0] sm:$0xff] }
 0x329   :  { %v193_v40 = vmul.f32 %v653_v37, %v649_v7 }
 0x32b   :  { %v655_v39 = vpop.eup %654  ;;  %v227_v43 = vsel %vm95_vm4, %v193_v40, %v209_v38 }
 0x32c   :  { %v225_v41 = vmul.f32 %v655_v39, %v647_v2  ;;  %v413_v2 = vld [vmem:[%s863_s2 + $0xb8] sm:$0xff] }
 0x32d   :  { %v632_v3 = vpack.c.bf16 %v413_v2, %v412_v1 }
 0x32e   :  { %v229_v44 = vsel %vm228_vm11, %v227_v43, %v225_v41 }
 0x32f   :  { %v231_v45 = vsel %vm230_vm12, %v229_v44, %v226_v42 }
 0x330   :  { %v233_v46 = vsel %vm232_vm13, %v231_v45, 0.0 }
 0x331   :  { %558 = vmatmul.mubr.msk.f32.vlgmr.msra.gmra.mrb[0].mxu1 %vm244_vm14, %v233_v46 }
 0x332   :  { %595 = vmatprep.mubr.msk.f32.mxu1 %vm682_vm1, %v683_v35  ;;  %v408_v35 = vld [vmem:[%s863_s2 + $0x90] sm:$0xff]  ;;  %624 = vmatpush3.bf16.msra.mxu1 %v623_v53  ;;  %s656_s2 = scalar_lea.vmem %s499_s14, 32 }
 0x333   :  { %v626_v55 = vpack.c.bf16 %v409_v54, %v408_v35  ;;  %625 = vmatprep.subr.bf16.mxu1 %v681_v33  ;;  %p657_p0 = scmp.ne.s32.totalorder %s499_s14, %s656_s2  ;;  %p662_p2 = scmp.lt.s32.totalorder %s656_s2, %s656_s2 }
 0x335   :  { %p663_p3 = por %p662_p2, %p661_p1 }
 0x336   :  { %627 = vmatpush3.bf16.msra.mxu1 %v626_v55 }
 0x337   :  { %628 = vmatprep.subr.bf16.mxu1 %v681_v33  ;;  %p664_p4 = pnand %p663_p3, %p657_p0 }
 0x33a   :  { %630 = vmatpush3.bf16.msra.mxu1 %v629_v58 }
 0x33b   :  { %631 = vmatprep.subr.bf16.mxu1 %v681_v33  ;;  %v329_v33 = vsub.s32 2, %v711_v4 }
 0x33d   :  { %v330_v5 = vrot.slane %v748_v51, %v329_v33 }
 0x33e   :  { %633 = vmatpush3.bf16.msra.mxu1 %v632_v3 }
 0x404   :  { %v314_v61 = vpop.f32.mrb[0].mxu1 }
 0x405   :  { %v315_v62 = vadd.f32 %v314_v61, %v243_v60  ;;  %v559_v63 = vpop.f32.mrb[1].mxu1 }
 0x407   :  { %v318_v0 = vmax.f32 %v315_v62, 0.0 }
 0x409   :  { %577 = vmatmul.mubr.msk.f32.vlgmr.msra.gmra.mrb[2].mxu0 %vm331_vm15, %v318_v0 }
 0x4dc   :  { %v401_v6 = vpop.f32.mrb[2].mxu0 }
 0x4dd   :  { %v402_v7 = vadd.f32 %v401_v6, %v330_v5  ;;  %v578_v8 = vpop.f32.mrb[3].mxu0 }
 0x4df   :  { %v405_v9 = vmax.f32 %v402_v7, 0.0 }
 0x4e1   :  { %596 = vmatmul.mubr.msk.f32.vlgmr.msra.gmra.mrb[2].mxu1 %vm331_vm15, %v405_v9 }
 0x5b4   :  { %v487_v12 = vpop.f32.mrb[2].mxu1 }
 0x5b5   :  { %v488_v13 = vadd.f32 %v487_v12, %v417_v11  ;;  %v597_v14 = vpop.f32.mrb[3].mxu1 }
 0x5b7   :  { %491 = vst.msk [vmem:[#allocation2] sm:$0x3] %vm182_vm10, %v488_v13 }
 0x5b8   :  { %667 = shalt.err (!%p664_p4)
}
 0x5b9   :  { %s668_s16 = scalar_lea.hbm %s864_s3, 32 }
 0x5ba   :  { %p669_p5 = scmp.ne.s32.totalorder %s864_s3, %s668_s16  ;;  %p672_p6 = scmp.lt.u32.totalorder %s668_s16, %s864_s3 }
 0x5bc   :  { %p674_p7 = pnand %p672_p6, %p669_p5 }
 0x5be   :  { %677 = shalt.err (!%p674_p7)
}
 0x5bf   :  { %501 = dma.vmem_to_hbm [thread:$0]  %s499_s14, 32, %s864_s3, [#allocation3]  }
 0x5c0   :  { %678 = dma.done.wait [#allocation3], 32  }
 0x5c1   :  { %679 = vsyncadd [#allocation3], 4294967264 }
 0x5c2   :  { %505 = vsyncpa [#allocation3], 1 }

</bundles_post_ra>
